<compile_context>
chip_gen: v6e
topology: v6e:2x2x1
jax: 0.10.0
libtpu: 0.0.40
codegen_flags: <defaults>
</compile_context>

<pallas_src>
import functools
import math

import jax
import jax.numpy as jnp
from jax import lax
from jax.experimental import pallas as pl
from jax.experimental.pallas import tpu as pltpu

LANE = 128


def _round_up(x, m):
    return ((x + m - 1) // m) * m


# ---------------------------------------------------------------------------
# Kernel A: fused Q/K/V projection prologue. Grid = (B, seq_tiles).
#   qx/kx/vx refs : (1, TP, D_in_p)  bf16
#   w* refs       : (D_in_p, D_out_p) bf16 (pre-transposed for x @ W)
#   b* refs       : (1, D_out_p)      f32
#   outputs       : (1, TP, D_out_p)  bf16 (Q output pre-scaled by 1/sqrt(d))
# ---------------------------------------------------------------------------
def _proj_kernel(qx_ref, kx_ref, vx_ref,
                 wq_ref, bq_ref, wk_ref, bk_ref, wv_ref, bv_ref,
                 qp_ref, kp_ref, vp_ref, *, scale):
    qp = jnp.dot(qx_ref[0], wq_ref[...],
                 preferred_element_type=jnp.float32) + bq_ref[...]
    qp_ref[0] = (qp * scale).astype(qp_ref.dtype)

    kp = jnp.dot(kx_ref[0], wk_ref[...],
                 preferred_element_type=jnp.float32) + bk_ref[...]
    kp_ref[0] = kp.astype(kp_ref.dtype)

    vp = jnp.dot(vx_ref[0], wv_ref[...],
                 preferred_element_type=jnp.float32) + bv_ref[...]
    vp_ref[0] = vp.astype(vp_ref.dtype)


# ---------------------------------------------------------------------------
# Kernel B: flash attention over projected bf16 Q/K/V.
# Grid = (B, q_tiles, kv_tiles); kv_tiles is the (arbitrary) reduction axis.
#   qp_ref : (1, TQ, D_out_p) bf16 (already scaled)
#   kp/vp  : (1, TK, D_out_p) bf16
#   o_ref  : (1, TQ, D_out_p) bf16
#   scratch: m/l (TQ, 1) f32, acc (TQ, D_out_p) f32
# ---------------------------------------------------------------------------
def _flash_kernel(qp_ref, kp_ref, vp_ref, o_ref,
                  m_sc, l_sc, acc_sc,
                  *, seq_len, tk, need_kmask, bf16_softmax):
    ki = pl.program_id(2)

    @pl.when(ki == 0)
    def _():
        m_sc[...] = jnp.full_like(m_sc, -jnp.inf)
        l_sc[...] = jnp.zeros_like(l_sc)
        acc_sc[...] = jnp.zeros_like(acc_sc)

    # scores (TQ, TK): contract the last (lane) dims directly — no transpose.
    s = lax.dot_general(qp_ref[0], kp_ref[0],
                        (((1,), (1,)), ((), ())),
                        preferred_element_type=jnp.float32)

    if need_kmask:
        # Padded key columns (sequence padding) must not receive weight:
        # zero-padded K rows still project to kp = b_k.
        col = ki * tk + lax.broadcasted_iota(jnp.int32, s.shape, 1)
        s = jnp.where(col < seq_len, s, -jnp.inf)

    # Online (flash-style) softmax update; running stats stay f32.
    m_prev = m_sc[...]
    m_new = jnp.maximum(m_prev, jnp.max(s, axis=-1, keepdims=True))
    alpha = jnp.exp(m_prev - m_new)
    if bf16_softmax:
        # v6e/v7x: bf16 EUP (~2x exp throughput); also feeds the MXU directly.
        p_mm = jnp.exp((s - m_new).astype(jnp.bfloat16))
        p_sum = jnp.sum(p_mm, axis=-1, keepdims=True, dtype=jnp.float32)
    else:
        # v5e (no bf16 EUP/VPU): keep exp in f32, cast once for the PV matmul.
        p_f32 = jnp.exp(s - m_new)
        p_sum = jnp.sum(p_f32, axis=-1, keepdims=True)
        p_mm = p_f32.astype(jnp.bfloat16)
    l_sc[...] = alpha * l_sc[...] + p_sum
    acc_sc[...] = alpha * acc_sc[...] + jnp.dot(
        p_mm, vp_ref[0], preferred_element_type=jnp.float32)
    m_sc[...] = m_new

    @pl.when(ki == pl.num_programs(2) - 1)
    def _():
        o_ref[0] = (acc_sc[...] *
                    pl.reciprocal(l_sc[...], approx=True)).astype(o_ref.dtype)


def self_attention(q, k, v, params):
    """q, k, v: (B, S, D_in) float32. params: nn.Linear-style weights/biases."""
    B, S, D_in = q.shape
    D_out = params["wq"].shape[0]

    D_in_p = _round_up(D_in, LANE)
    D_out_p = _round_up(D_out, LANE)

    # --- chip-aware knobs ----------------------------------------------------
    kind = ""
    try:
        kind = jax.devices()[0].device_kind.lower()
    except Exception:
        pass
    newer_gen = ("v6" in kind) or ("v7" in kind)
    bf16_softmax = newer_gen  # bf16 EUP only on v6e/v7x; v5e etc. keep f32.

    # --- tile selection -------------------------------------------------------
    # TQ capped at 256 (MXU width on v6e/v7x, keeps score-tile spill bounded on
    # v7x); TK bumped to 512 on v6e/v7x to amortize per-grid-step overhead.
    # On v7x the parallel grid extent is B * n_q — keep it >= 2 so both
    # TensorCores get work (true for any B >= 2).
    if S >= 256:
        TQ = 256
        TK = 512 if (newer_gen and S >= 512) else 256
    else:
        TQ = TK = max(8, _round_up(S, 8))
    S_pad = _round_up(S, max(TQ, TK))  # TQ divides TK here, so both tile evenly
    TP = TK                            # projection seq tile (divides S_pad)
    need_kmask = S_pad > S

    # --- wrapper-side layout plumbing (pre-transpose, pad, cast) --------------
    def prep_w(w):  # (D_out, D_in) -> (D_in_p, D_out_p), bf16, zero-padded
        wt = w.T.astype(jnp.bfloat16)
        return jnp.pad(wt, ((0, D_in_p - D_in), (0, D_out_p - D_out)))

    def prep_b(b):  # (D_out,) -> (1, D_out_p), f32, zero-padded
        return jnp.pad(b.astype(jnp.float32), (0, D_out_p - D_out)).reshape(1, D_out_p)

    def prep_x(x):  # (B, S, D_in) -> (B, S_pad, D_in_p), bf16, zero-padded
        return jnp.pad(x.astype(jnp.bfloat16),
                       ((0, 0), (0, S_pad - S), (0, D_in_p - D_in)))

    wq, wk, wv = prep_w(params["wq"]), prep_w(params["wk"]), prep_w(params["wv"])
    bq, bk, bv = prep_b(params["bq"]), prep_b(params["bk"]), prep_b(params["bv"])
    qx, kx, vx = prep_x(q), prep_x(k), prep_x(v)

    scale = 1.0 / math.sqrt(float(D_out))

    # --- Kernel A: one-shot Q/K/V projection ----------------------------------
    x_spec = pl.BlockSpec((1, TP, D_in_p), lambda b, si: (b, si, 0))
    w_spec = pl.BlockSpec((D_in_p, D_out_p), lambda b, si: (0, 0))
    bias_spec = pl.BlockSpec((1, D_out_p), lambda b, si: (0, 0))
    p_spec = pl.BlockSpec((1, TP, D_out_p), lambda b, si: (b, si, 0))
    proj_shape = jax.ShapeDtypeStruct((B, S_pad, D_out_p), jnp.bfloat16)

    qp, kp, vp = pl.pallas_call(
        functools.partial(_proj_kernel, scale=scale),
        out_shape=(proj_shape, proj_shape, proj_shape),
        grid_spec=pltpu.PrefetchScalarGridSpec(
            num_scalar_prefetch=0,
            grid=(B, S_pad // TP),
            in_specs=[x_spec, x_spec, x_spec,
                      w_spec, bias_spec, w_spec, bias_spec, w_spec, bias_spec],
            out_specs=(p_spec, p_spec, p_spec)),
        compiler_params=pltpu.CompilerParams(
            dimension_semantics=("parallel", "parallel")),
    )(qx, kx, vx, wq, bq, wk, bk, wv, bv)

    # --- Kernel B: flash attention ---------------------------------------------
    q_spec = pl.BlockSpec((1, TQ, D_out_p), lambda b, qi, ki: (b, qi, 0))
    kv_spec = pl.BlockSpec((1, TK, D_out_p), lambda b, qi, ki: (b, ki, 0))
    o_spec = pl.BlockSpec((1, TQ, D_out_p), lambda b, qi, ki: (b, qi, 0))

    out_padded = pl.pallas_call(
        functools.partial(_flash_kernel, seq_len=S, tk=TK,
                          need_kmask=need_kmask, bf16_softmax=bf16_softmax),
        out_shape=jax.ShapeDtypeStruct((B, S_pad, D_out_p), jnp.bfloat16),
        grid_spec=pltpu.PrefetchScalarGridSpec(
            num_scalar_prefetch=0,
            grid=(B, S_pad // TQ, S_pad // TK),
            in_specs=[q_spec, kv_spec, kv_spec],
            out_specs=o_spec,
            scratch_shapes=[
                pltpu.VMEM((TQ, 1), jnp.float32),        # running max
                pltpu.VMEM((TQ, 1), jnp.float32),        # running denom
                pltpu.VMEM((TQ, D_out_p), jnp.float32),  # running numerator
            ]),
        compiler_params=pltpu.CompilerParams(
            dimension_semantics=("parallel", "parallel", "arbitrary")),
    )(qp, kp, vp)

    # Slice off feature/sequence padding; restore f32 module semantics
    # (kernel-side writeback stays bf16).
    return out_padded[:, :S, :D_out].astype(jnp.float32)


def _reference(q, k, v, params):
    """Pure-f32 JAX reference mirroring the PyTorch forward."""
    def linear(x, w, b):
        return x @ w.T + b
    qp = linear(q, params["wq"], params["bq"])
    kp = linear(k, params["wk"], params["bk"])
    vp = linear(v, params["wv"], params["bv"])
    d_out = qp.shape[-1]
    scores = jnp.einsum("bsd,btd->bst", qp, kp) / math.sqrt(d_out)
    p = jax.nn.softmax(scores, axis=-1)
    return jnp.einsum("bst,btd->bsd", p, vp)


if __name__ == "__main__":
    B, S, D_in, D_out = 2, 8, 32, 32

    key = jax.random.PRNGKey(0)
    kq, kk, kv, kwq, kbq, kwk, kbk, kwv, kbv = jax.random.split(key, 9)

    q = jax.random.normal(kq, (B, S, D_in), dtype=jnp.float32)
    k = jax.random.normal(kk, (B, S, D_in), dtype=jnp.float32)
    v = jax.random.normal(kv, (B, S, D_in), dtype=jnp.float32)

    # PyTorch nn.Linear init: U(-1/sqrt(in), 1/sqrt(in))
    bound = 1.0 / math.sqrt(D_in)
    params = {
        "wq": jax.random.uniform(kwq, (D_out, D_in), minval=-bound, maxval=bound),
        "bq": jax.random.uniform(kbq, (D_out,), minval=-bound, maxval=bound),
        "wk": jax.random.uniform(kwk, (D_out, D_in), minval=-bound, maxval=bound),
        "bk": jax.random.uniform(kbk, (D_out,), minval=-bound, maxval=bound),
        "wv": jax.random.uniform(kwv, (D_out, D_in), minval=-bound, maxval=bound),
        "bv": jax.random.uniform(kbv, (D_out,), minval=-bound, maxval=bound),
    }

    out = self_attention(q, k, v, params)
    out = jax.block_until_ready(out)

    ref = _reference(q, k, v, params)
    assert out.shape == (B, S, D_out)
    # bf16 MXU operands, bf16 softmax path (v6e/v7x), bf16 output and approx
    # reciprocal -> loosened tolerance (all accumulation is f32).
    assert jnp.allclose(out, ref, atol=4e-2, rtol=4e-2), "mismatch vs reference"

    print("KERNEL_OK")
</pallas_src>

<mosaic_0001>
module attributes {stable_mosaic.version = 11 : i64} {
  func.func @_proj_kernel(%arg0: i32, %arg1: i32, %arg2: memref<1x8x128xbf16, #tpu.memory_space<vmem>>, %arg3: memref<1x8x128xbf16, #tpu.memory_space<vmem>>, %arg4: memref<1x8x128xbf16, #tpu.memory_space<vmem>>, %arg5: memref<128x128xbf16, #tpu.memory_space<vmem>>, %arg6: memref<1x128xf32, #tpu.memory_space<vmem>>, %arg7: memref<128x128xbf16, #tpu.memory_space<vmem>>, %arg8: memref<1x128xf32, #tpu.memory_space<vmem>>, %arg9: memref<128x128xbf16, #tpu.memory_space<vmem>>, %arg10: memref<1x128xf32, #tpu.memory_space<vmem>>, %arg11: memref<1x8x128xbf16, #tpu.memory_space<vmem>>, %arg12: memref<1x8x128xbf16, #tpu.memory_space<vmem>>, %arg13: memref<1x8x128xbf16, #tpu.memory_space<vmem>>) attributes {dimension_semantics = [#tpu.dimension_semantics<parallel>, #tpu.dimension_semantics<parallel>], iteration_bounds = array<i64: 2, 1>, scalar_prefetch = 0 : i64, scratch_operands = 0 : i64, tpu.core_type = #tpu.core_type<tc>, window_params = [{transform_indices = @transform_0, window_bounds = array<i64: 1, 8, 128>}, {transform_indices = @transform_1, window_bounds = array<i64: 1, 8, 128>}, {transform_indices = @transform_2, window_bounds = array<i64: 1, 8, 128>}, {pipeline_mode = #tpu.pipeline_mode<synchronous>, transform_indices = @transform_3, window_bounds = array<i64: 128, 128>}, {pipeline_mode = #tpu.pipeline_mode<synchronous>, transform_indices = @transform_4, window_bounds = array<i64: 1, 128>}, {pipeline_mode = #tpu.pipeline_mode<synchronous>, transform_indices = @transform_5, window_bounds = array<i64: 128, 128>}, {pipeline_mode = #tpu.pipeline_mode<synchronous>, transform_indices = @transform_6, window_bounds = array<i64: 1, 128>}, {pipeline_mode = #tpu.pipeline_mode<synchronous>, transform_indices = @transform_7, window_bounds = array<i64: 128, 128>}, {pipeline_mode = #tpu.pipeline_mode<synchronous>, transform_indices = @transform_8, window_bounds = array<i64: 1, 128>}, {transform_indices = @transform_9, window_bounds = array<i64: 1, 8, 128>}, {transform_indices = @transform_10, window_bounds = array<i64: 1, 8, 128>}, {transform_indices = @transform_11, window_bounds = array<i64: 1, 8, 128>}]} {
    %c0 = arith.constant 0 : index
    %c0_0 = arith.constant 0 : index
    %c0_1 = arith.constant 0 : index
    %0 = vector.load %arg2[%c0, %c0_0, %c0_1] : memref<1x8x128xbf16, #tpu.memory_space<vmem>>, vector<1x8x128xbf16>
    %1 = vector.shape_cast %0 : vector<1x8x128xbf16> to vector<8x128xbf16>
    %c0_2 = arith.constant 0 : index
    %c0_3 = arith.constant 0 : index
    %2 = vector.load %arg5[%c0_2, %c0_3] : memref<128x128xbf16, #tpu.memory_space<vmem>>, vector<128x128xbf16>
    %cst = arith.constant dense<0.000000e+00> : vector<8x128xf32>
    %3 = tpu.matmul %1, %2, %cst {dimension_numbers = #tpu.dot_dimension_numbers<[1], [0], [0], [1], [0, 0, 1, 1], [], []>} : vector<8x128xbf16>, vector<128x128xbf16>, vector<8x128xf32> -> vector<8x128xf32>
    %c0_4 = arith.constant 0 : index
    %c0_5 = arith.constant 0 : index
    %4 = vector.load %arg6[%c0_4, %c0_5] : memref<1x128xf32, #tpu.memory_space<vmem>>, vector<1x128xf32>
    %5 = vector.broadcast %4 : vector<1x128xf32> to vector<8x128xf32>
    %6 = arith.addf %3, %5 : vector<8x128xf32>
    %cst_6 = arith.constant 0.176776692 : f32
    %7 = vector.broadcast %cst_6 : f32 to vector<8x128xf32>
    %8 = arith.mulf %6, %7 : vector<8x128xf32>
    %9 = arith.truncf %8 : vector<8x128xf32> to vector<8x128xbf16>
    %c0_7 = arith.constant 0 : index
    %c0_8 = arith.constant 0 : index
    %c0_9 = arith.constant 0 : index
    %10 = vector.load %arg11[%c0_7, %c0_8, %c0_9] : memref<1x8x128xbf16, #tpu.memory_space<vmem>>, vector<1x8x128xbf16>
    %11 = vector.shape_cast %10 : vector<1x8x128xbf16> to vector<8x128xbf16>
    %12 = vector.shape_cast %9 : vector<8x128xbf16> to vector<1x8x128xbf16>
    tpu.vector_store %arg11[%c0_7, %c0_8, %c0_9], %12 {strides = array<i32>} : memref<1x8x128xbf16, #tpu.memory_space<vmem>>, vector<1x8x128xbf16>,
    %c0_10 = arith.constant 0 : index
    %c0_11 = arith.constant 0 : index
    %c0_12 = arith.constant 0 : index
    %13 = vector.load %arg3[%c0_10, %c0_11, %c0_12] : memref<1x8x128xbf16, #tpu.memory_space<vmem>>, vector<1x8x128xbf16>
    %14 = vector.shape_cast %13 : vector<1x8x128xbf16> to vector<8x128xbf16>
    %c0_13 = arith.constant 0 : index
    %c0_14 = arith.constant 0 : index
    %15 = vector.load %arg7[%c0_13, %c0_14] : memref<128x128xbf16, #tpu.memory_space<vmem>>, vector<128x128xbf16>
    %cst_15 = arith.constant dense<0.000000e+00> : vector<8x128xf32>
    %16 = tpu.matmul %14, %15, %cst_15 {dimension_numbers = #tpu.dot_dimension_numbers<[1], [0], [0], [1], [0, 0, 1, 1], [], []>} : vector<8x128xbf16>, vector<128x128xbf16>, vector<8x128xf32> -> vector<8x128xf32>
    %c0_16 = arith.constant 0 : index
    %c0_17 = arith.constant 0 : index
    %17 = vector.load %arg8[%c0_16, %c0_17] : memref<1x128xf32, #tpu.memory_space<vmem>>, vector<1x128xf32>
    %18 = vector.broadcast %17 : vector<1x128xf32> to vector<8x128xf32>
    %19 = arith.addf %16, %18 : vector<8x128xf32>
    %20 = arith.truncf %19 : vector<8x128xf32> to vector<8x128xbf16>
    %c0_18 = arith.constant 0 : index
    %c0_19 = arith.constant 0 : index
    %c0_20 = arith.constant 0 : index
    %21 = vector.load %arg12[%c0_18, %c0_19, %c0_20] : memref<1x8x128xbf16, #tpu.memory_space<vmem>>, vector<1x8x128xbf16>
    %22 = vector.shape_cast %21 : vector<1x8x128xbf16> to vector<8x128xbf16>
    %23 = vector.shape_cast %20 : vector<8x128xbf16> to vector<1x8x128xbf16>
    tpu.vector_store %arg12[%c0_18, %c0_19, %c0_20], %23 {strides = array<i32>} : memref<1x8x128xbf16, #tpu.memory_space<vmem>>, vector<1x8x128xbf16>,
    %c0_21 = arith.constant 0 : index
    %c0_22 = arith.constant 0 : index
    %c0_23 = arith.constant 0 : index
    %24 = vector.load %arg4[%c0_21, %c0_22, %c0_23] : memref<1x8x128xbf16, #tpu.memory_space<vmem>>, vector<1x8x128xbf16>
    %25 = vector.shape_cast %24 : vector<1x8x128xbf16> to vector<8x128xbf16>
    %c0_24 = arith.constant 0 : index
    %c0_25 = arith.constant 0 : index
    %26 = vector.load %arg9[%c0_24, %c0_25] : memref<128x128xbf16, #tpu.memory_space<vmem>>, vector<128x128xbf16>
    %cst_26 = arith.constant dense<0.000000e+00> : vector<8x128xf32>
    %27 = tpu.matmul %25, %26, %cst_26 {dimension_numbers = #tpu.dot_dimension_numbers<[1], [0], [0], [1], [0, 0, 1, 1], [], []>} : vector<8x128xbf16>, vector<128x128xbf16>, vector<8x128xf32> -> vector<8x128xf32>
    %c0_27 = arith.constant 0 : index
    %c0_28 = arith.constant 0 : index
    %28 = vector.load %arg10[%c0_27, %c0_28] : memref<1x128xf32, #tpu.memory_space<vmem>>, vector<1x128xf32>
    %29 = vector.broadcast %28 : vector<1x128xf32> to vector<8x128xf32>
    %30 = arith.addf %27, %29 : vector<8x128xf32>
    %31 = arith.truncf %30 : vector<8x128xf32> to vector<8x128xbf16>
    %c0_29 = arith.constant 0 : index
    %c0_30 = arith.constant 0 : index
    %c0_31 = arith.constant 0 : index
    %32 = vector.load %arg13[%c0_29, %c0_30, %c0_31] : memref<1x8x128xbf16, #tpu.memory_space<vmem>>, vector<1x8x128xbf16>
    %33 = vector.shape_cast %32 : vector<1x8x128xbf16> to vector<8x128xbf16>
    %34 = vector.shape_cast %31 : vector<8x128xbf16> to vector<1x8x128xbf16>
    tpu.vector_store %arg13[%c0_29, %c0_30, %c0_31], %34 {strides = array<i32>} : memref<1x8x128xbf16, #tpu.memory_space<vmem>>, vector<1x8x128xbf16>,
    return
  }
  func.func @transform_0(%arg0: i32, %arg1: i32) -> (i32, i32, i32) {
    %c0_i32 = arith.constant 0 : i32
    %c0_i32_0 = arith.constant 0 : i32
    return %arg0, %arg1, %c0_i32 : i32, i32, i32
  }
  func.func @transform_1(%arg0: i32, %arg1: i32) -> (i32, i32, i32) {
    %c0_i32 = arith.constant 0 : i32
    %c0_i32_0 = arith.constant 0 : i32
    return %arg0, %arg1, %c0_i32 : i32, i32, i32
  }
  func.func @transform_2(%arg0: i32, %arg1: i32) -> (i32, i32, i32) {
    %c0_i32 = arith.constant 0 : i32
    %c0_i32_0 = arith.constant 0 : i32
    return %arg0, %arg1, %c0_i32 : i32, i32, i32
  }
  func.func @transform_3(%arg0: i32, %arg1: i32) -> (i32, i32) {
    %c0_i32 = arith.constant 0 : i32
    %c0_i32_0 = arith.constant 0 : i32
    %c0_i32_1 = arith.constant 0 : i32
    return %c0_i32, %c0_i32_0 : i32, i32
  }
  func.func @transform_4(%arg0: i32, %arg1: i32) -> (i32, i32) {
    %c0_i32 = arith.constant 0 : i32
    %c0_i32_0 = arith.constant 0 : i32
    %c0_i32_1 = arith.constant 0 : i32
    return %c0_i32, %c0_i32_0 : i32, i32
  }
  func.func @transform_5(%arg0: i32, %arg1: i32) -> (i32, i32) {
    %c0_i32 = arith.constant 0 : i32
    %c0_i32_0 = arith.constant 0 : i32
    %c0_i32_1 = arith.constant 0 : i32
    return %c0_i32, %c0_i32_0 : i32, i32
  }
  func.func @transform_6(%arg0: i32, %arg1: i32) -> (i32, i32) {
    %c0_i32 = arith.constant 0 : i32
    %c0_i32_0 = arith.constant 0 : i32
    %c0_i32_1 = arith.constant 0 : i32
    return %c0_i32, %c0_i32_0 : i32, i32
  }
  func.func @transform_7(%arg0: i32, %arg1: i32) -> (i32, i32) {
    %c0_i32 = arith.constant 0 : i32
    %c0_i32_0 = arith.constant 0 : i32
    %c0_i32_1 = arith.constant 0 : i32
    return %c0_i32, %c0_i32_0 : i32, i32
  }
  func.func @transform_8(%arg0: i32, %arg1: i32) -> (i32, i32) {
    %c0_i32 = arith.constant 0 : i32
    %c0_i32_0 = arith.constant 0 : i32
    %c0_i32_1 = arith.constant 0 : i32
    return %c0_i32, %c0_i32_0 : i32, i32
  }
  func.func @transform_9(%arg0: i32, %arg1: i32) -> (i32, i32, i32) {
    %c0_i32 = arith.constant 0 : i32
    %c0_i32_0 = arith.constant 0 : i32
    return %arg0, %arg1, %c0_i32 : i32, i32, i32
  }
  func.func @transform_10(%arg0: i32, %arg1: i32) -> (i32, i32, i32) {
    %c0_i32 = arith.constant 0 : i32
    %c0_i32_0 = arith.constant 0 : i32
    return %arg0, %arg1, %c0_i32 : i32, i32, i32
  }
  func.func @transform_11(%arg0: i32, %arg1: i32) -> (i32, i32, i32) {
    %c0_i32 = arith.constant 0 : i32
    %c0_i32_0 = arith.constant 0 : i32
    return %arg0, %arg1, %c0_i32 : i32, i32, i32
  }
}

</mosaic_0001>

<bundles_post_ra>
// kernel: tpu_custom_call.1
= control target key start
LH: loop header
LB: loop body
LE: loop exit
PB: predicated region body
PF: predicated region fallthrough
CT: control target
= control target key end

     0   :  { %s2216_s0 = inlined_call_operand.hbm [shape: bf16[2,8,128], index: 0, kind: input, shape index: {}]   ;;  %s2217_s1 = inlined_call_operand.hbm [shape: bf16[2,8,128], index: 1, kind: input, shape index: {}]   ;;  %s2218_s2 = inlined_call_operand.hbm [shape: bf16[2,8,128], index: 2, kind: input, shape index: {}]   ;;  %s2219_s3 = inlined_call_operand.hbm [shape: bf16[128,128], index: 3, kind: input, shape index: {}]   ;;  %s2220_s4 = inlined_call_operand.vmem [shape: f32[1,128], index: 4, kind: input, shape index: {}]   ;;  %s2221_s5 = inlined_call_operand.hbm [shape: bf16[128,128], index: 5, kind: input, shape index: {}]   ;;  %s2222_s6 = inlined_call_operand.vmem [shape: f32[1,128], index: 6, kind: input, shape index: {}]   ;;  %s2223_s7 = inlined_call_operand.hbm [shape: bf16[128,128], index: 7, kind: input, shape index: {}]   ;;  %s2224_s8 = inlined_call_operand.vmem [shape: f32[1,128], index: 8, kind: input, shape index: {}]   ;;  %s2225_s9 = inlined_call_operand.hbm [shape: bf16[2,8,128], index: 9, kind: output, shape index: {0}]   ;;  %s2226_s10 = inlined_call_operand.hbm [shape: bf16[2,8,128], index: 10, kind: output, shape index: {1}]   ;;  %s2227_s11 = inlined_call_operand.hbm [shape: bf16[2,8,128], index: 11, kind: output, shape index: {2}]  }
   0x1   :  { %2248 = sst [smem:[#allocation29_spill]] %s2217_s1 }
   0x2   :  { %2249 = sst [smem:[#allocation30_spill]] %s2219_s3 }
   0x3   :  { %2250 = sst [smem:[#allocation31_spill]] %s2221_s5 }
   0x4   :  { %2251 = sst [smem:[#allocation32_spill]] %s2224_s8 }
   0x5   :  { %2252 = sst [smem:[#allocation33_spill]] %s2226_s10 }
   0x6   :  { %2253 = sst [smem:[#allocation34_spill]] %s2227_s11 }
   0x7   :  { %17 = vsyncpa [#allocation3], 0 }
   0x8   :  { %19 = vsyncpa [#allocation3 + $0x1], 0 }
   0x9   :  { %20 = vsyncpa [#allocation6], 0 }
   0xa   :  { %22 = vsyncpa [#allocation6 + $0x1], 0 }
   0xb   :  { %23 = vsyncpa [#allocation9], 0 }
   0xc   :  { %24 = vsyncpa [#allocation12], 0 }
   0xd   :  { %25 = vsyncpa [#allocation4], 0 }
   0xe   :  { %27 = vsyncpa [#allocation4 + $0x1], 0 }
   0xf   :  { %28 = vsyncpa [#allocation15], 0 }
  0x10   :  { %30 = vsyncpa [#allocation15 + $0x1], 0  ;;  %s1847_s17 = smov 0   ;;  %s1849_s18 = smov 0  }
  0x11   :  { %s1851_s19 = smov 0   ;;  %s1853_s20 = smov 0  }
  0x12   :  { %s1855_s21 = smov 0   ;;  %s1857_s22 = smov 0  }
  0x13 LB: > { %2254 = sst [smem:[#allocation23_spill]] %s1752_s17  ;;  %s1878_s23 = sadd.s32 4294967295, %s1772_s22   ;;  %s1772_s22 = sphi %s1857_s22, %s36_s22   ;;  %s1768_s21 = sphi %s1855_s21, %s2295_s21   ;;  %s1764_s20 = sphi %s1853_s20, %s2294_s20   ;;  %s1760_s19 = sphi %s1851_s19, %s2298_s19   ;;  %s1756_s18 = sphi %s1849_s18, %s2297_s18   ;;  %s1752_s17 = sphi %s1847_s17, %s2296_s17  }
  0x14   : > { %2255 = sst [smem:[#allocation24_spill]] %s1768_s21  ;;  %s2228_s24 = sadd.s32 4294967294, %s1772_s22  }
  0x15   : > { %2256 = sst [smem:[#allocation25_spill]] %s1772_s22  ;;  %p70_p0 = scmp.ne.s32.totalorder %s1756_s18, %s1752_s17 }
  0x16   : > { %p2242_p1 = scmp.eq.s32.totalorder %s1878_s23, 0  ;;  %p284_p3 = scmp.eq.s32.totalorder %s2228_s24, 1 }
  0x17   : > { %p1178_p5 = scmp.ge.s32.totalorder %s1772_s22, 1  ;;  %p347_p7 = scmp.lt.s32.totalorder %s1772_s22, 3 }
  0x18   : > { %p1889_p4 = por %p2242_p1, %p70_p0  ;;  %p1894_p6 = por %p284_p3, %p70_p0 }
  0x19   : > { %p1899_p8 = pnand %p1178_p5, %p347_p7  ;;  %s1774_s28 = smov [#allocation8]  }
  0x1a   : > { %s2257_s25 = scalar_select %p1889_p4, 1, 0 }
  0x1b   : > { %s2258_s26 = scalar_select %p1894_p6, 1, 0 }
  0x1c   : > { %s2260_s27 = scalar_select %p1899_p8, 1, 0 }
  0x1d   : > { %2259 = sst [smem:[#allocation26_spill]] %s2258_s26  ;;  %s359_s29 = sshll.u32 %s1774_s28, 4  ;;  %s360_s29 = int_to_ptr.vmem [resolvable:$true] %s359_s29 }
  0x1e   : > { %p1345_p9 = pneg %p1899_p8  ;;  %s48_s12 = sadd.s32 1, %s1768_s21 }
  0x1f   : > { %s1473_s13 = scalar_lea.vmem %s360_s29, 1024  ;;  %p1481_p5 = scmp.lt.s32.totalorder %s360_s29, %s360_s29 }
  0x20   : > { %p1908_p11 = pnand %p1345_p9, %p2242_p1  ;;  %p1474_p13 = scmp.ne.s32.totalorder %s360_s29, %s1473_s13 }
  0x21   : > { %p1482_p7 = scmp.lt.s32.totalorder %s1473_s13, %s1473_s13 }
  0x22   : > { %p2243_p12 = pneg %p1908_p11 }
  0x23   : > { %p1483_p2 = por %p1482_p7, %p1481_p5 }
  0x24   : > { %p1476_p0 = pnand %p1474_p13, %p2243_p12 }
  0x26   : > { %p1477_p3 = pneg %p1476_p0 }
  0x28   : > { %p1484_p10 = pnand %p1483_p2, %p1477_p3 }
  0x2a   : > { %1487 = shalt.err (!%p1484_p10)
}
  0x2b   : > { %s2231_s14 = smov 64   ;;  %s2233_s15 = smov 4  }
  0x2c   : > { %s2262_s3 = sld [smem:[#allocation30_spill]]  ;;  %p50_p2 = scmp.ge.s32.totalorder %s48_s12, 2 }
  0x2d   : > { %s57_s13 = sadd.s32 1, %s1760_s19  ;;  %p64_p9 = scmp.ne.s32.totalorder %s1760_s19, %s1756_s18 }
  0x2e   : > { %p65_p10 = scmp.eq.s32.totalorder %s1772_s22, 0  ;;  %s2300_s12 = smov (%p50_p2, %s48_s12), 0 }
  0x2f   : > { %2263 = sst [smem:[#allocation27_spill]] %s2300_s12  ;;  %p2264_p0 = scmp.eq.s32.totalorder %s1878_s23, 1 }
  0x30   : > { %p66_p13 = por %p65_p10, %p64_p9  ;;  %s52_s26 = ssub.s32 %s1768_s21, %s2300_s12 }
  0x31   : > { %p1934_p3 = por %p2264_p0, %p64_p9  ;;  %p1378_p5 = scmp.lt.s32.totalorder %s1772_s22, 2 }
  0x32   : > { %1348 = dma.hbm_to_vmem [thread:$0]  (!%p1908_p11), %s2262_s3, 1024, %s360_s29, [#allocation9], %s2231_s14, %s2231_s14, %s2233_s15  }
  0x33   : > { %s2265_s24 = scalar_select %p1934_p3, 1, 0 }
  0x34   : > { %p55_p7 = scmp.eq.s32.totalorder %s52_s26, 0  ;;  %s2237_s17 = sand.u32 1, %s1760_s19  }
  0x35   : > { %s1944_s29 = sshll.u32 %s2237_s17, 2  ;;  %s1947_s16 = sshll.u32 %s1768_s21, 6 }
  0x36   : > { %s1950_s28 = scalar_select %p55_p7, %s1760_s19, %s57_s13  }
  0x37   : > { %p1952_p2 = pnand %p1378_p5, %p66_p13  ;;  %s427_s15 = sand.u32 1, %s1772_s22  }
  0x38   : > { %2266 = sst [smem:[#allocation28_spill]] %s1950_s28  ;;  %s431_s11 = scalar_lea.vmem [#allocation5], %s1944_s29 }
  0x39   : > { %s2268_s1 = sld [smem:[#allocation29_spill]]  ;;  %s439_s17 = sshll.u32 %s431_s11, 4  ;;  %s440_s17 = int_to_ptr.vmem [resolvable:$true] %s439_s17 }
  0x3a   : > { %s1777_s8 = smov [#allocation10]   ;;  %s1962_s10 = scalar_lea.sflag [#allocation6], %s427_s15 }
  0x3b   : > { %s375_s21 = sshll.u32 %s1777_s8, 4  ;;  %p2244_p9 = pneg %p1952_p2  ;;  %s376_s21 = int_to_ptr.vmem [resolvable:$true] %s375_s21 }
  0x3c   : > { %s1501_s13 = scalar_lea.vmem %s440_s17, 64  ;;  %s1778_s28 = smov [#allocation5]  }
  0x3d   : > { %p1502_p10 = scmp.ne.s32.totalorder %s440_s17, %s1501_s13  ;;  %s1506_s22 = sshll.u32 %s1778_s28, 4  ;;  %s1507_s22 = int_to_ptr.vmem [resolvable:$false] %s1506_s22 }
  0x3e   : > { %s1508_s3 = scalar_lea.vmem %s1507_s22, 128  ;;  %p1509_p5 = scmp.lt.s32.totalorder %s440_s17, %s1507_s22 }
  0x3f   : > { %s437_s26 = scalar_lea.hbm %s2268_s1, %s1947_s16  ;;  %p1504_p13 = pnand %p1502_p10, %p2244_p9 }
  0x40   : > { %p1510_p7 = scmp.lt.s32.totalorder %s1508_s3, %s1501_s13 }
  0x41   : > { %p1505_p0 = pneg %p1504_p13 }
  0x42   : > { %p1511_p1 = por %p1510_p7, %p1509_p5 }
  0x44   : > { %p1512_p12 = pnand %p1511_p1, %p1505_p0 }
  0x46   : > { %1515 = shalt.err (!%p1512_p12)
}
  0x47   : > { %1361 = dma.hbm_to_vmem [thread:$0]  (!%p1952_p2), %s437_s26, 64, %s440_s17, %s1962_s10  }
  0x48   : > { %s1527_s8 = scalar_lea.vmem %s376_s21, 1024  ;;  %p2269_p10 = pneg %p1908_p11 }
  0x49   : > { %p1528_p6 = scmp.ne.s32.totalorder %s376_s21, %s1527_s8  ;;  %p1535_p3 = scmp.lt.s32.totalorder %s376_s21, %s376_s21 }
  0x4a   : > { %p1536_p4 = scmp.lt.s32.totalorder %s1527_s8, %s1527_s8 }
  0x4b   : > { %p1530_p13 = pnand %p1528_p6, %p2269_p10 }
  0x4c   : > { %p1537_p8 = por %p1536_p4, %p1535_p3 }
  0x4d   : > { %p1531_p9 = pneg %p1530_p13 }
  0x4f   : > { %p1538_p5 = pnand %p1537_p8, %p1531_p9 }
  0x51   : > { %1541 = shalt.err (!%p1538_p5)
}
  0x52   : > { %s2270_s11 = smov 4   ;;  %s2271_s22 = smov 64  }
  0x53   : > { %s2272_s5 = sld [smem:[#allocation31_spill]]  ;;  %s1779_s17 = smov [#allocation11]  }
  0x54   : > { %s391_s28 = sshll.u32 %s1779_s17, 4  ;;  %p2273_p6 = pmov %p2269_p10  ;;  %s392_s28 = int_to_ptr.vmem [resolvable:$true] %s391_s28 }
  0x55   : > { %s1553_s26 = scalar_lea.vmem %s392_s28, 1024  ;;  %p1561_p12 = scmp.lt.s32.totalorder %s392_s28, %s392_s28 }
  0x56   : > { %p1554_p1 = scmp.ne.s32.totalorder %s392_s28, %s1553_s26  ;;  %p1562_p3 = scmp.lt.s32.totalorder %s1553_s26, %s1553_s26 }
  0x58   : > { %p1556_p4 = pnand %p1554_p1, %p2273_p6  ;;  %p1563_p9 = por %p1562_p3, %p1561_p12 }
  0x59   : > { %1351 = dma.hbm_to_vmem [thread:$0]  (!%p1908_p11), %s2272_s5, 1024, %s376_s21, [#allocation9], %s2271_s22, %s2271_s22, %s2270_s11  }
  0x5a   : > { %p1557_p8 = pneg %p1556_p4 }
  0x5c   : > { %p1564_p0 = pnand %p1563_p9, %p1557_p8 }
  0x5e   : > { %1567 = shalt.err (!%p1564_p0)
}
  0x5f   : > { %1354 = dma.hbm_to_vmem [thread:$0]  (!%p1908_p11), %s2223_s7, 1024, %s392_s28, [#allocation12], %s2271_s22, %s2271_s22, %s2270_s11  }
  0x60   : > { %s418_s12 = scalar_lea.hbm %s2216_s0, %s1947_s16  ;;  %s412_s15 = scalar_lea.vmem [#allocation2], %s1944_s29 }
  0x61   : > { %s420_s17 = sshll.u32 %s412_s15, 4  ;;  %s2274_s26 = sand.u32 1, %s1760_s19   ;;  %s421_s17 = int_to_ptr.vmem [resolvable:$true] %s420_s17 }
  0x62   : > { %s409_s30 = scalar_lea.sflag [#allocation3], %s2274_s26  ;;  %s1581_s1 = scalar_lea.vmem %s421_s17, 64 }
  0x63   : > { %p1582_p7 = scmp.ne.s32.totalorder %s421_s17, %s1581_s1  ;;  %p2275_p10 = pneg %p1952_p2 }
  0x64   : > { %s1780_s21 = smov [#allocation2]  }
  0x65   : > { %p1584_p13 = pnand %p1582_p7, %p2275_p10  ;;  %s1586_s13 = sshll.u32 %s1780_s21, 4  ;;  %s1587_s13 = int_to_ptr.vmem [resolvable:$false] %s1586_s13 }
  0x66   : > { %s1588_s5 = scalar_lea.vmem %s1587_s13, 128  ;;  %p1589_p11 = scmp.lt.s32.totalorder %s421_s17, %s1587_s13 }
  0x67   : > { %p1585_p5 = pneg %p1584_p13  ;;  %p1590_p1 = scmp.lt.s32.totalorder %s1588_s5, %s1581_s1 }
  0x69   : > { %p1591_p6 = por %p1590_p1, %p1589_p11 }
  0x6b   : > { %p1592_p4 = pnand %p1591_p6, %p1585_p5 }
  0x6d   : > { %1595 = shalt.err (!%p1592_p4)
}
  0x6e   : > { %1358 = dma.hbm_to_vmem [thread:$0]  (!%p1952_p2), %s418_s12, 64, %s421_s17, %s409_s30  }
  0x6f   : > { %s456_s28 = scalar_lea.hbm %s2218_s2, %s1947_s16  ;;  %s450_s3 = scalar_lea.vmem [#allocation7], %s1944_s29 }
  0x70   : > { %s458_s8 = sshll.u32 %s450_s3, 4  ;;  %p2276_p12 = pmov %p2275_p10  ;;  %s459_s8 = int_to_ptr.vmem [resolvable:$true] %s458_s8 }
  0x71   : > { %s1609_s15 = scalar_lea.vmem %s459_s8, 64  ;;  %s1781_s1 = smov [#allocation7]  }
  0x72   : > { %p1610_p8 = scmp.ne.s32.totalorder %s459_s8, %s1609_s15  ;;  %s1614_s5 = sshll.u32 %s1781_s1, 4  ;;  %s1615_s5 = int_to_ptr.vmem [resolvable:$false] %s1614_s5 }
  0x73   : > { %s1616_s26 = scalar_lea.vmem %s1615_s5, 128  ;;  %p1617_p0 = scmp.lt.s32.totalorder %s459_s8, %s1615_s5 }
  0x74   : > { %p1612_p3 = pnand %p1610_p8, %p2276_p12  ;;  %p1618_p7 = scmp.lt.s32.totalorder %s1616_s26, %s1609_s15 }
  0x76   : > { %p1613_p9 = pneg %p1612_p3  ;;  %p1619_p10 = por %p1618_p7, %p1617_p0 }
  0x78   : > { %p1620_p13 = pnand %p1619_p10, %p1613_p9 }
  0x7a   : > { %1623 = shalt.err (!%p1620_p13)
}
  0x7b   : > { %1364 = dma.hbm_to_vmem [thread:$0]  (!%p1952_p2), %s456_s28, 64, %s459_s8, %s1962_s10  }
  0x7c   : > { %p2277_p5 = scmp.ne.s32.totalorder %s2260_s27, 0 }
  0x7d   : > { %s2020_s29 = sand.u32 (!%p2277_p5), 1, %s1756_s18   ;;  %p2278_p11 = scmp.ne.s32.totalorder (!%p2277_p5), %s2257_s25, 0 }
  0x7e   : > { %467 = sbr.rel (%p2277_p5) target bundleno = 435 (0x1b3), region = 56  ;;  %s2023_s16 = sshll.u32 (!%p2277_p5), %s2020_s29, 2 }
  0x7f   : > { %s470_s12 = scalar_lea.sflag (!%p2277_p5), [#allocation3], %s2020_s29  ;;  %s473_s17 = scalar_lea.vmem (!%p2277_p5), [#allocation2], %s2023_s16 }
  0x83   : > { %1727 = dma.done.wait (%p2278_p11), %s470_s12, 64  }
  0x84   : > { %1729 = vsyncadd (%p2278_p11), %s470_s12, 4294967232  ;;  %s478_s10 = sand.u32 1, %s1878_s23   ;;  %s482_s14 = scalar_lea.vmem [#allocation5], %s2023_s16 }
  0x85   : > { %s479_s27 = scalar_lea.sflag [#allocation6], %s478_s10 }
  0x86   : > { %1731 = dma.done.wait (%p2278_p11), %s479_s27, 128  }
  0x87   : > { %1733 = vsyncadd (%p2278_p11), %s479_s27, 4294967168  ;;  %s491_s30 = scalar_lea.vmem [#allocation7], %s2023_s16  ;;  %p2279_p2 = scmp.eq.s32.totalorder %s1878_s23, 0 }
  0x89   : > { %1735 = dma.done.wait (%p2279_p2), [#allocation9], 2048   ;;  %p2280_p1 = pmov %p2279_p2 }
  0x8b   : > { %1737 = vsyncadd (%p2280_p1), [#allocation9], 4294965248  ;;  %p2281_p6 = pmov %p2280_p1 }
  0x8c   : > { %p2282_p4 = pmov %p2280_p1 }
  0x8d   : > { %1739 = dma.done.wait (%p2281_p6), [#allocation12], 1024  }
  0x8e   : > { %1741 = vsyncadd (%p2282_p4), [#allocation12], 4294966272  ;;  %v1782_v0 = vmov 0.0   ;;  %vm1783_vm0 = vmmov 0   ;;  %v1438_v1 = vld [vmem:[#allocation8 + $0x38] sm:$0xff]   ;;  %v1439_v2 = vld [vmem:[#allocation8 + $0x30] sm:$0xff]  }
  0x8f   : > { %1261 = vmatprep.subr.bf16.mxu0 %v1782_v0  ;;  %1281 = vmatprep.subr.bf16.mxu1 %v1782_v0  ;;  %v1440_v3 = vld [vmem:[#allocation8 + $0x28] sm:$0xff]   ;;  %v1445_v4 = vld [vmem:[#allocation10 + $0x38] sm:$0xff]   ;;  %v1447_v5 = vld [vmem:[#allocation10 + $0x30] sm:$0xff]   ;;  %s2088_s13 = sshll.u32 %s1764_s20, 6  ;;  %s547_s11 = scalar_lea.vmem [#allocation13], %s2023_s16 }
  0x90   : > { %1277 = vmatprep.mubr.msk.bf16.mxu0 %vm1783_vm0, %v1782_v0  ;;  %1297 = vmatprep.mubr.msk.bf16.mxu1 %vm1783_vm0, %v1782_v0  ;;  %v1441_v6 = vld [vmem:[#allocation8 + $0x20] sm:$0xff]   ;;  %v1449_v7 = vld [vmem:[#allocation10 + $0x28] sm:$0xff]   ;;  %v1442_v8 = vld [vmem:[#allocation8 + $0x18] sm:$0xff]   ;;  %s931_s22 = sshll.u32 %s547_s11, 4  ;;  %s2098_s1 = scalar_lea.hbm %s2225_s9, %s2088_s13  ;;  %s2100_s22 = int_to_ptr.vmem [resolvable:$true] %s931_s22 }
  0x91   : > { %1262 = vmatpush3.bf16.msra.mxu0 %v1438_v1  ;;  %1282 = vmatpush3.bf16.msra.mxu1 %v1445_v4  ;;  %v1451_v9 = vld [vmem:[#allocation10 + $0x20] sm:$0xff]   ;;  %v1443_v10 = vld [vmem:[#allocation8 + $0x10] sm:$0xff]   ;;  %v1453_v11 = vld [vmem:[#allocation10 + $0x18] sm:$0xff]   ;;  %s554_s20 = scalar_lea.vmem [#allocation14], %s2023_s16  ;;  %s907_s26 = scalar_lea.sflag [#allocation4], %s2020_s29 }
  0x92   : > { %1263 = vmatprep.subr.bf16.mxu0 %v1782_v0  ;;  %1283 = vmatprep.subr.bf16.mxu1 %v1782_v0  ;;  %v1444_v12 = vld [vmem:[#allocation8 + $0x8] sm:$0xff]   ;;  %v1455_v13 = vld [vmem:[#allocation10 + $0x10] sm:$0xff]   ;;  %v1446_v14 = vld [vmem:[#allocation8] sm:$0xff]   ;;  %s2105_s5 = sshll.u32 %s554_s20, 4  ;;  %s1624_s12 = scalar_lea.vmem %s2100_s22, 64  ;;  %s2135_s5 = int_to_ptr.vmem [resolvable:$true] %s2105_s5 }
  0x93   : > { %v1457_v15 = vld [vmem:[#allocation10 + $0x8] sm:$0xff]   ;;  %v1448_v17 = vld [vmem:[#allocation11 + $0x38] sm:$0xff]   ;;  %v1459_v18 = vld [vmem:[#allocation10] sm:$0xff]   ;;  %p1625_p8 = scmp.ne.s32.totalorder %s2100_s22, %s1624_s12  ;;  %p2283_p12 = scmp.ne.s32.totalorder %s2265_s24, 0 }
  0x94   : > { %v563_v16 = vld [vmem:[%s473_s17] sm:$0xf]  ;;  %v1450_v19 = vld [vmem:[#allocation11 + $0x30] sm:$0xff]   ;;  %v1454_v22 = vld [vmem:[#allocation11 + $0x20] sm:$0xff]   ;;  %s1784_s17 = smov [#allocation13]  }
  0x95   : > { %1264 = vmatpush3.bf16.msra.mxu0 %v1439_v2  ;;  %1284 = vmatpush3.bf16.msra.mxu1 %v1447_v5  ;;  %v678_v20 = vld [vmem:[%s482_s14] sm:$0xf]  ;;  %v1452_v21 = vld [vmem:[#allocation11 + $0x28] sm:$0xff]   ;;  %v1456_v23 = vld [vmem:[#allocation11 + $0x18] sm:$0xff]   ;;  %p1626_p3 = pnand %p1625_p8, %p2283_p12  ;;  %s1628_s27 = sshll.u32 %s1784_s17, 4  ;;  %s1629_s27 = int_to_ptr.vmem [resolvable:$false] %s1628_s27 }
  0x96   : > { %1265 = vmatprep.subr.bf16.mxu0 %v1782_v0  ;;  %1285 = vmatprep.subr.bf16.mxu1 %v1782_v0  ;;  %v1458_v24 = vld [vmem:[#allocation11 + $0x10] sm:$0xff]   ;;  %v1460_v25 = vld [vmem:[#allocation11 + $0x8] sm:$0xff]   ;;  %v1461_v26 = vld [vmem:[#allocation11] sm:$0xff]   ;;  %s1630_s14 = scalar_lea.vmem %s1629_s27, 128  ;;  %p1631_p0 = scmp.lt.s32.totalorder %s2100_s22, %s1629_s27 }
  0x97   : > { %v792_v27 = vld [vmem:[%s491_s30] sm:$0xf]  ;;  %v1199_v28 = vld [vmem:[%s2220_s4] ss:$0 sm:$0xff]  ;;  %p1627_p9 = pneg %p1626_p3  ;;  %p1632_p7 = scmp.lt.s32.totalorder %s1630_s14, %s1624_s12 }
  0x98   : > { %v1208_v35 = vld [vmem:[%s2222_s6] ss:$0 sm:$0xff] }
  0x99   : > { %1266 = vmatpush3.bf16.msra.mxu0 %v1440_v3  ;;  %1286 = vmatpush3.bf16.msra.mxu1 %v1449_v7  ;;  %p1633_p10 = por %p1632_p7, %p1631_p0 }
  0x9a   : > { %1267 = vmatprep.subr.bf16.mxu0 %v1782_v0  ;;  %1287 = vmatprep.subr.bf16.mxu1 %v1782_v0 }
  0x9b   : > { %p1634_p13 = pnand %p1633_p10, %p1627_p9 }
  0x9d   : > { %1268 = vmatpush3.bf16.msra.mxu0 %v1441_v6  ;;  %1288 = vmatpush3.bf16.msra.mxu1 %v1451_v9 }
  0x9e   : > { %1269 = vmatprep.subr.bf16.mxu0 %v1782_v0  ;;  %1289 = vmatprep.subr.bf16.mxu1 %v1782_v0 }
  0xa1   : > { %1270 = vmatpush3.bf16.msra.mxu0 %v1442_v8  ;;  %1290 = vmatpush3.bf16.msra.mxu1 %v1453_v11 }
  0xa2   : > { %1271 = vmatprep.subr.bf16.mxu0 %v1782_v0  ;;  %1291 = vmatprep.subr.bf16.mxu1 %v1782_v0 }
  0xa5   : > { %1272 = vmatpush3.bf16.msra.mxu0 %v1443_v10  ;;  %1292 = vmatpush3.bf16.msra.mxu1 %v1455_v13 }
  0xa6   : > { %1273 = vmatprep.subr.bf16.mxu0 %v1782_v0  ;;  %1293 = vmatprep.subr.bf16.mxu1 %v1782_v0 }
  0xa9   : > { %1274 = vmatpush3.bf16.msra.mxu0 %v1444_v12  ;;  %1294 = vmatpush3.bf16.msra.mxu1 %v1457_v15 }
  0xaa   : > { %1275 = vmatprep.subr.bf16.mxu0 %v1782_v0  ;;  %1295 = vmatprep.subr.bf16.mxu1 %v1782_v0 }
  0xad   : > { %1276 = vmatpush3.bf16.msra.mxu0 %v1446_v14  ;;  %1296 = vmatpush3.bf16.msra.mxu1 %v1459_v18 }
  0xae   : > { %1301 = vmatprep.subr.bf16.mxu0 %v1782_v0 }
  0xb0   : > { %1278 = vmatmul.mubr.bf16.vlgmr.msra.gmra.mxu0 %v563_v16  ;;  %1298 = vmatmul.mubr.bf16.vlgmr.msra.gmra.mxu1 %v678_v20 }
  0xb1   : > { %1302 = vmatpush3.bf16.msra.mxu0 %v1448_v17  ;;  %1317 = vmatprep.mubr.msk.bf16.mxu0 %vm1783_vm0, %v1782_v0 }
  0xb2   : > { %1303 = vmatprep.subr.bf16.mxu0 %v1782_v0 }
  0xb5   : > { %1304 = vmatpush3.bf16.msra.mxu0 %v1450_v19 }
  0xb6   : > { %1305 = vmatprep.subr.bf16.mxu0 %v1782_v0 }
  0xb9   : > { %1306 = vmatpush3.bf16.msra.mxu0 %v1452_v21 }
  0xba   : > { %1307 = vmatprep.subr.bf16.mxu0 %v1782_v0 }
  0xbd   : > { %1308 = vmatpush3.bf16.msra.mxu0 %v1454_v22 }
  0xbe   : > { %1309 = vmatprep.subr.bf16.mxu0 %v1782_v0 }
  0xc1   : > { %1310 = vmatpush3.bf16.msra.mxu0 %v1456_v23 }
  0xc2   : > { %1311 = vmatprep.subr.bf16.mxu0 %v1782_v0 }
  0xc5   : > { %1312 = vmatpush3.bf16.msra.mxu0 %v1458_v24 }
  0xc6   : > { %1313 = vmatprep.subr.bf16.mxu0 %v1782_v0 }
  0xc9   : > { %1314 = vmatpush3.bf16.msra.mxu0 %v1460_v25 }
  0xca   : > { %1315 = vmatprep.subr.bf16.mxu0 %v1782_v0 }
  0xcd   : > { %1316 = vmatpush3.bf16.msra.mxu0 %v1461_v26 }
  0xd0   : > { %1318 = vmatmul.mubr.bf16.vlgmr.msra.gmra.mxu0 %v792_v27 }
 0x170   : > { %v669_v29 = vpop.f32.mrf.mxu0  ;;  %v784_v37 = vpop.f32.mrf.mxu1 }
 0x171   : > { %v670_v30 = vadd.f32 %v1199_v28, %v669_v29  ;;  %v785_v38 = vadd.f32 %v1208_v35, %v784_v37 }
 0x172   : > { %v1279_v31 = vpop.f32.mrf.mxu0 }
 0x173   : > { %v675_v32 = vmul.f32 0.17677669, %v670_v30 }
 0x174   : > { %v672_v33 = vpop.f32.mrf.mxu0 }
 0x175   : > { %v676_v34 = vpack.c.bf16 %v675_v32, %v675_v32 }
 0x176   : > { %v1280_v36 = vpop.f32.mrf.mxu0 }
 0x177   : > { %677 = vst [vmem:[%s547_s11] sm:$0xf] %v676_v34 }
 0x178   : > { %1637 = shalt.err (!%p1634_p13)
}
 0x179   : > { %s1638_s30 = scalar_lea.hbm %s2098_s1, 64  ;;  %s1642_s21 = scalar_lea.hbm %s2225_s9, 128 }
 0x17a   : > { %p1639_p5 = scmp.ne.s32.totalorder %s2098_s1, %s1638_s30  ;;  %p1643_p1 = scmp.lt.s32.totalorder %s2098_s1, %s2225_s9 }
 0x17b   : > { %p1644_p6 = scmp.lt.s32.totalorder %s1642_s21, %s1638_s30 }
 0x17c   : > { %p1640_p11 = pnand %p1639_p5, %p2283_p12 }
 0x17d   : > { %p1645_p4 = por %p1644_p6, %p1643_p1 }
 0x17e   : > { %p1641_p2 = pneg %p1640_p11 }
 0x180   : > { %p1646_p8 = pnand %p1645_p4, %p1641_p2 }
 0x182   : > { %1649 = shalt.err (!%p1646_p8)
}
 0x183   : > { %1339 = dma.vmem_to_hbm [thread:$0]  (%p2283_p12), %s2100_s22, 64, %s2098_s1, %s907_s26   ;;  %v1299_v39 = vpop.f32.mrf.mxu1  ;;  %v790_v40 = vpack.c.bf16 %v785_v38, %v785_v38 }
 0x184   : > { %s2284_s15 = sld [smem:[#allocation33_spill]]  ;;  %s2141_s17 = scalar_lea.sflag [#allocation15], %s478_s10 }
 0x185   : > { %v787_v41 = vpop.f32.mrf.mxu1  ;;  %791 = vst [vmem:[%s554_s20] sm:$0xf] %v790_v40  ;;  %s1650_s22 = scalar_lea.vmem %s2135_s5, 64  ;;  %s1785_s1 = smov [#allocation14]  }
 0x186   : > { %p1651_p3 = scmp.ne.s32.totalorder %s2135_s5, %s1650_s22  ;;  %s1654_s26 = sshll.u32 %s1785_s1, 4  ;;  %s1655_s26 = int_to_ptr.vmem [resolvable:$false] %s1654_s26 }
 0x187   : > { %v1300_v42 = vpop.f32.mrf.mxu1  ;;  %s1656_s27 = scalar_lea.vmem %s1655_s26, 128  ;;  %p1657_p7 = scmp.lt.s32.totalorder %s2135_s5, %s1655_s26 }
 0x188   : > { %p1652_p9 = pnand %p1651_p3, %p2283_p12  ;;  %p1658_p10 = scmp.lt.s32.totalorder %s1656_s27, %s1650_s22 }
 0x18a   : > { %s2132_s12 = scalar_lea.hbm %s2284_s15, %s2088_s13  ;;  %p1653_p0 = pneg %p1652_p9 }
 0x18b   : > { %p1659_p13 = por %p1658_p10, %p1657_p7 }
 0x18d   : > { %p1660_p5 = pnand %p1659_p13, %p1653_p0 }
 0x18f   : > { %1663 = shalt.err (!%p1660_p5)
}
 0x190   : > { %s1664_s23 = scalar_lea.hbm %s2132_s12, 64  ;;  %s1668_s14 = scalar_lea.hbm %s2284_s15, 128 }
 0x191   : > { %p1665_p11 = scmp.ne.s32.totalorder %s2132_s12, %s1664_s23  ;;  %p1669_p6 = scmp.lt.s32.totalorder %s2132_s12, %s2284_s15 }
 0x192   : > { %p1670_p4 = scmp.lt.s32.totalorder %s1668_s14, %s1664_s23 }
 0x193   : > { %p1666_p2 = pnand %p1665_p11, %p2283_p12 }
 0x194   : > { %p1671_p8 = por %p1670_p4, %p1669_p6 }
 0x195   : > { %p1667_p1 = pneg %p1666_p2 }
 0x197   : > { %p1672_p3 = pnand %p1671_p8, %p1667_p1 }
 0x199   : > { %1675 = shalt.err (!%p1672_p3)
}
 0x19a   : > { %1340 = dma.vmem_to_hbm [thread:$0]  (%p2283_p12), %s2135_s5, 64, %s2132_s12, %s2141_s17   ;;  %v898_v44 = vpop.f32.mrf.mxu0 }
 0x19b   : > { %s2285_s11 = sld [smem:[#allocation32_spill]]  ;;  %s561_s28 = scalar_lea.vmem [#allocation16], %s2023_s16 }
 0x19c   : > { %s959_s3 = sshll.u32 %s561_s28, 4  ;;  %v1319_v46 = vpop.f32.mrf.mxu0  ;;  %s2286_s1 = sld [smem:[#allocation34_spill]]  ;;  %s960_s3 = int_to_ptr.vmem [resolvable:$true] %s959_s3 }
 0x19d   : > { %s1676_s5 = scalar_lea.vmem %s960_s3, 64  ;;  %s1786_s12 = smov [#allocation16]  }
 0x19e   : > { %v901_v48 = vpop.f32.mrf.mxu0  ;;  %p1677_p9 = scmp.ne.s32.totalorder %s960_s3, %s1676_s5  ;;  %s1680_s16 = sshll.u32 %s1786_s12, 4  ;;  %s1681_s16 = int_to_ptr.vmem [resolvable:$false] %s1680_s16 }
 0x19f   : > { %s1682_s27 = scalar_lea.vmem %s1681_s16, 128  ;;  %p1683_p10 = scmp.lt.s32.totalorder %s960_s3, %s1681_s16 }
 0x1a0   : > { %v1320_v49 = vpop.f32.mrf.mxu0  ;;  %p1678_p0 = pnand %p1677_p9, %p2283_p12  ;;  %p1684_p13 = scmp.lt.s32.totalorder %s1682_s27, %s1676_s5 }
 0x1a1   : > { %v1217_v43 = vld [vmem:[%s2285_s11] ss:$0 sm:$0xff] }
 0x1a2   : > { %v899_v45 = vadd.f32 %v1217_v43, %v898_v44  ;;  %s2172_s26 = scalar_lea.hbm %s2286_s1, %s2088_s13  ;;  %p1679_p7 = pneg %p1678_p0 }
 0x1a3   : > { %p1685_p5 = por %p1684_p13, %p1683_p10 }
 0x1a4   : > { %v904_v47 = vpack.c.bf16 %v899_v45, %v899_v45 }
 0x1a5   : > { %p1686_p11 = pnand %p1685_p5, %p1679_p7 }
 0x1a6   : > { %905 = vst [vmem:[%s561_s28] sm:$0xf] %v904_v47 }
 0x1a7   : > { %1689 = shalt.err (!%p1686_p11)
}
 0x1a8   : > { %s1690_s13 = scalar_lea.hbm %s2172_s26, 64  ;;  %s1694_s20 = scalar_lea.hbm %s2286_s1, 128 }
 0x1a9   : > { %p1691_p2 = scmp.ne.s32.totalorder %s2172_s26, %s1690_s13  ;;  %p1695_p4 = scmp.lt.s32.totalorder %s2172_s26, %s2286_s1 }
 0x1aa   : > { %p1696_p8 = scmp.lt.s32.totalorder %s1694_s20, %s1690_s13 }
 0x1ab   : > { %p1692_p1 = pnand %p1691_p2, %p2283_p12 }
 0x1ac   : > { %p1697_p3 = por %p1696_p8, %p1695_p4 }
 0x1ad   : > { %p1693_p6 = pneg %p1692_p1 }
 0x1af   : > { %p1698_p9 = pnand %p1697_p3, %p1693_p6 }
 0x1b1   : > { %1701 = shalt.err (!%p1698_p9)
}
 0x1b2   : > { %1341 = dma.vmem_to_hbm [thread:$0]  (%p2283_p12), %s960_s3, 64, %s2172_s26, %s2141_s17  }
 0x1b3 PF: > { %s2287_s29 = sld [smem:[#allocation23_spill]] }
 0x1b4   : > { %s2288_s25 = sld [smem:[#allocation26_spill]] }
 0x1b5   : > { %s2289_s21 = sld [smem:[#allocation25_spill]] }
 0x1b9   : > { %s971_s11 = sand.u32 1, %s2287_s29  }
 0x1ba   : > { %p2290_p0 = scmp.ne.s32.totalorder %s2288_s25, 0  ;;  %s972_s28 = scalar_lea.sflag [#allocation4], %s971_s11 }
 0x1bb   : > { %p2291_p7 = scmp.ge.s32.totalorder %s2289_s21, 2 }
 0x1bd   : > { %p1366_p10 = pnand %p2291_p7, %p2290_p0 }
 0x1bf   : > { %p1367_p13 = pneg %p1366_p10 }
 0x1c1   : > { %1743 = dma.done.wait (%p1367_p13), %s972_s28, 64  }
 0x1c2   : > { %1745 = vsyncadd (%p1367_p13), %s972_s28, 4294967232  ;;  %s2292_s8 = sadd.s32 4294967294, %s2289_s21  }
 0x1c3   : > { %s980_s22 = sand.u32 1, %s2292_s8  }
 0x1c4   : > { %s981_s5 = scalar_lea.sflag [#allocation15], %s980_s22 }
 0x1c5   : > { %1747 = dma.done.wait (%p1367_p13), %s981_s5, 128  }
 0x1c6   : > { %1749 = vsyncadd (%p1367_p13), %s981_s5, 4294967168  ;;  %s36_s22 = sadd.s32 1, %s2289_s21   ;;  %s2293_s24 = sld [smem:[#allocation28_spill]] }
 0x1c7   : > { %p33_p12 = scmp.ge.s32.totalorder %s36_s22, 4   ;;  %s2294_s20 = sld [smem:[#allocation24_spill]] }
 0x1c8   : > { %s2295_s21 = sld [smem:[#allocation27_spill]]  ;;  %s2296_s17 = smov %s1756_s18 }
 0x1c9   : > { %s2297_s18 = smov %s1760_s19  ;;  %35 = sbr.rel (!%p33_p12) target bundleno = 19 (0x13), region = 169 }
 0x1cc   : > { %s2298_s19 = smov %s2293_s24 }
 0x1ce   :  { %995 = vsyncpa [#allocation3], 1 }
 0x1cf   :  { %997 = vsyncpa [#allocation3 + $0x1], 1 }
 0x1d0   :  { %998 = vsyncpa [#allocation6], 1 }
 0x1d1   :  { %1000 = vsyncpa [#allocation6 + $0x1], 1 }
 0x1d2   :  { %1001 = vsyncpa [#allocation9], 1 }
 0x1d3   :  { %1002 = vsyncpa [#allocation12], 1 }
 0x1d4   :  { %1003 = vsyncpa [#allocation4], 1 }
 0x1d5   :  { %1005 = vsyncpa [#allocation4 + $0x1], 1 }
 0x1d6   :  { %1006 = vsyncpa [#allocation15], 1 }
 0x1d7   :  { %1008 = vsyncpa [#allocation15 + $0x1], 1 }

</bundles_post_ra>
